<compile_context>
chip_gen: v5e
topology: v5e:2x2
jax: 0.10.0
libtpu: 0.0.40
codegen_flags: <defaults>
</compile_context>

<pallas_src>
import jax
import jax.numpy as jnp
from jax import lax
from jax.experimental import pallas as pl
from jax.experimental.pallas import tpu as pltpu

LANE_TARGET = 128    # fold pixels into lanes until I/O is >=128-lane dense
LANE_CAP = 256       # cap on folded lane width (keeps kron(I_k, W) small)
ROW_TILE = 512       # folded-row tile used only for the padding fallback
ROW_FULL_CAP = 1024  # at or below this many folded rows: single grid step


# ---------------------------------------------------------------------------
# Pallas kernels
# ---------------------------------------------------------------------------
def _conv_bias_relu_kernel(x_ref, w_ref, b_ref, o_ref):
    # 1x1 conv (per-pixel matmul over channels) with BN already folded into
    # the weight columns; only the BN shift remains as a bias row.
    y = jnp.dot(x_ref[...], w_ref[...], preferred_element_type=jnp.float32)
    o_ref[...] = jnp.maximum(y + b_ref[...], 0.0).astype(o_ref.dtype)


def _fft_conv_bias_relu_kernel(xr_ref, xi_ref, wrr_ref, wir_ref, wri_ref,
                               wii_ref, br_ref, bi_ref, or_ref, oi_ref):
    # FourierUnit conv+BN+ReLU fused over the real/imag interleave.  Inputs
    # and outputs stay as separate real/imag slabs (no stack/permute pass);
    # BN scale already folded into the weight columns.
    xr = xr_ref[...]
    xi = xi_ref[...]
    yr = (jnp.dot(xr, wrr_ref[...], preferred_element_type=jnp.float32)
          + jnp.dot(xi, wir_ref[...], preferred_element_type=jnp.float32)
          + br_ref[...])
    yi = (jnp.dot(xr, wri_ref[...], preferred_element_type=jnp.float32)
          + jnp.dot(xi, wii_ref[...], preferred_element_type=jnp.float32)
          + bi_ref[...])
    or_ref[...] = jnp.maximum(yr, 0.0).astype(or_ref.dtype)
    oi_ref[...] = jnp.maximum(yi, 0.0).astype(oi_ref.dtype)


def _add3_conv_kernel(a_ref, b_ref, c_ref, w_ref, o_ref):
    # fused (x1 + fu_out + lfu_out) followed by bias-free 1x1 conv (conv2)
    s = a_ref[...] + b_ref[...] + c_ref[...]
    o_ref[...] = jnp.dot(
        s, w_ref[...], preferred_element_type=jnp.float32
    ).astype(o_ref.dtype)


# ---------------------------------------------------------------------------
# Tiling helpers (lane folding + row tiling)
# ---------------------------------------------------------------------------
def _fold_factor(m, cin, cout):
    """Divisor k of m: fold k pixels into the lane dimension.

    Preference:
      1) smallest k making BOTH k*cin and k*cout multiples of 128
         (fully unmasked loads AND stores, smallest block-diag weight),
      2) else smallest k making the narrow side reach >=128 lanes,
      3) else the largest admissible divisor.
    Folded width is capped at LANE_CAP so kron(I_k, W) stays small.
    """
    cap = max(1, LANE_CAP // max(cin, cout))
    divisors = [k for k in range(1, cap + 1) if m % k == 0]
    dense = [k for k in divisors
             if (k * cin) % LANE_TARGET == 0 and (k * cout) % LANE_TARGET == 0]
    if dense:
        return min(dense)
    wide = [k for k in divisors if k * min(cin, cout) >= LANE_TARGET]
    if wide:
        return min(wide)
    return max(divisors)


def _row_tiling(mf):
    """Return (row_tile, padded_rows); prefers the largest divisor tile."""
    if mf <= ROW_FULL_CAP:
        return mf, mf                      # single grid step, no padding
    for t in (1024, 512, 256, 128, 64, 32, 16, 8):
        if mf % t == 0:
            return t, mf
    # rare fallback: pad to a multiple of ROW_TILE (garbage rows sliced off)
    mp = ((mf + ROW_TILE - 1) // ROW_TILE) * ROW_TILE
    return ROW_TILE, mp


def _block_diag(w, k):
    """kron(I_k, w): block-diagonal weight for the lane-folded matmul."""
    if k == 1:
        return w
    return jnp.kron(jnp.eye(k, dtype=w.dtype), w)


# ---------------------------------------------------------------------------
# Pallas wrappers
# ---------------------------------------------------------------------------
def conv1x1_bn_relu(x2d, w, scale, shift):
    m, cin = x2d.shape
    cout = w.shape[1]
    w_eff = w * scale[None, :].astype(w.dtype)       # fold BN scale into conv
    k = _fold_factor(m, cin, cout)
    mf = m // k
    kin, kout = k * cin, k * cout
    xf = x2d.reshape(mf, kin)                        # free row-major view
    wf = _block_diag(w_eff, k)
    bf = jnp.tile(shift, k).reshape(1, kout).astype(jnp.float32)
    tr, mp = _row_tiling(mf)
    if mp != mf:
        xf = jnp.pad(xf, ((0, mp - mf), (0, 0)))
    out = pl.pallas_call(
        _conv_bias_relu_kernel,
        out_shape=jax.ShapeDtypeStruct((mp, kout), x2d.dtype),
        grid=(mp // tr,),
        in_specs=[
            pl.BlockSpec((tr, kin), lambda i: (i, 0)),
            pl.BlockSpec((kin, kout), lambda i: (0, 0)),
            pl.BlockSpec((1, kout), lambda i: (0, 0)),
        ],
        out_specs=pl.BlockSpec((tr, kout), lambda i: (i, 0)),
        compiler_params=pltpu.CompilerParams(dimension_semantics=("parallel",)),
    )(xf, wf, bf)
    return out[:mf].reshape(m, cout)


def fft_conv_bn_relu(xr2d, xi2d, w, scale, shift):
    """FourierUnit's conv+BN+ReLU on separate real/imag slabs.

    `w`/`scale`/`shift` follow PyTorch's interleaved 2C layout
    (channel 2j = real of channel j, 2j+1 = imag of channel j); the split and
    the BN-scale fold are done here on the host, so the kernel sees four
    plain dense matmuls plus a bias-add / ReLU."""
    m, c = xr2d.shape
    wrr, wir = w[0::2, 0::2], w[1::2, 0::2]
    wri, wii = w[0::2, 1::2], w[1::2, 1::2]
    sr, si = scale[0::2], scale[1::2]
    br, bi = shift[0::2], shift[1::2]
    # fold BN scale into the weight columns (per output channel)
    wrr = wrr * sr[None, :]
    wir = wir * sr[None, :]
    wri = wri * si[None, :]
    wii = wii * si[None, :]

    k = _fold_factor(m, c, c)
    mf = m // k
    kc = k * c
    wrr, wir, wri, wii = [_block_diag(a, k) for a in (wrr, wir, wri, wii)]
    brf = jnp.tile(br, k).reshape(1, kc).astype(jnp.float32)
    bif = jnp.tile(bi, k).reshape(1, kc).astype(jnp.float32)

    tr, mp = _row_tiling(mf)
    xrf = xr2d.reshape(mf, kc)
    xif = xi2d.reshape(mf, kc)
    if mp != mf:
        pad = ((0, mp - mf), (0, 0))
        xrf = jnp.pad(xrf, pad)
        xif = jnp.pad(xif, pad)

    row_spec = pl.BlockSpec((tr, kc), lambda i: (i, 0))
    w_spec = pl.BlockSpec((kc, kc), lambda i: (0, 0))
    v_spec = pl.BlockSpec((1, kc), lambda i: (0, 0))
    out_r, out_i = pl.pallas_call(
        _fft_conv_bias_relu_kernel,
        out_shape=(jax.ShapeDtypeStruct((mp, kc), xr2d.dtype),
                   jax.ShapeDtypeStruct((mp, kc), xr2d.dtype)),
        grid=(mp // tr,),
        in_specs=[row_spec, row_spec,
                  w_spec, w_spec, w_spec, w_spec,
                  v_spec, v_spec],
        out_specs=(row_spec, row_spec),
        compiler_params=pltpu.CompilerParams(dimension_semantics=("parallel",)),
    )(xrf, xif, wrr, wir, wri, wii, brf, bif)
    return out_r[:mf].reshape(m, c), out_i[:mf].reshape(m, c)


def add3_conv1x1(a2d, b2d, c2d, w):
    m, cin = a2d.shape
    cout = w.shape[1]
    k = _fold_factor(m, cin, cout)
    mf = m // k
    kin, kout = k * cin, k * cout
    wf = _block_diag(w, k)
    tr, mp = _row_tiling(mf)
    af = a2d.reshape(mf, kin)
    bf = b2d.reshape(mf, kin)
    cf = c2d.reshape(mf, kin)
    if mp != mf:
        pad = ((0, mp - mf), (0, 0))
        af, bf, cf = jnp.pad(af, pad), jnp.pad(bf, pad), jnp.pad(cf, pad)
    in_spec = pl.BlockSpec((tr, kin), lambda i: (i, 0))
    out = pl.pallas_call(
        _add3_conv_kernel,
        out_shape=jax.ShapeDtypeStruct((mp, kout), a2d.dtype),
        grid=(mp // tr,),
        in_specs=[in_spec, in_spec, in_spec,
                  pl.BlockSpec((kin, kout), lambda i: (0, 0))],
        out_specs=pl.BlockSpec((tr, kout), lambda i: (i, 0)),
        compiler_params=pltpu.CompilerParams(dimension_semantics=("parallel",)),
    )(af, bf, cf, wf)
    return out[:mf].reshape(m, cout)


# ---------------------------------------------------------------------------
# FourierUnit (channels-last): rfft2 -> fused Pallas conv+BN+ReLU -> irfft2
# ---------------------------------------------------------------------------
def fourier_unit_nhwc(x, weight, scale, shift):
    n, h, w_sp, c = x.shape
    ff = jnp.fft.rfft2(x, axes=(1, 2), norm="ortho")        # (n, h, wf, c)
    wf = ff.shape[2]
    xr = ff.real.reshape(-1, c)                             # free views
    xi = ff.imag.reshape(-1, c)
    yr, yi = fft_conv_bn_relu(xr, xi, weight, scale, shift)  # Pallas hot path
    comp = lax.complex(yr.reshape(n, h, wf, c), yi.reshape(n, h, wf, c))
    return jnp.fft.irfft2(comp, s=(h, w_sp), axes=(1, 2), norm="ortho")


# ---------------------------------------------------------------------------
# SpectralTransform forward (stride=1, groups=1, enable_lfu=True)
# ---------------------------------------------------------------------------
def spectral_transform(x_nchw, params, out_channels):
    # downsample == nn.Identity() for stride=1
    c_half = out_channels // 2
    x = jnp.transpose(x_nchw, (0, 2, 3, 1))                 # single NCHW->NHWC
    n, h, w_sp, cin = x.shape

    # conv1 + BN + ReLU
    x1 = conv1x1_bn_relu(x.reshape(n * h * w_sp, cin),
                         params["w1"], params["s1"], params["b1"])
    x1 = x1.reshape(n, h, w_sp, c_half)

    # global Fourier unit
    out_fu = fourier_unit_nhwc(x1, params["wfu"], params["sfu"], params["bfu"])

    # local Fourier unit (enable_lfu=True)
    c = c_half
    xs = x1[..., : c // 4]
    xs = jnp.concatenate(jnp.split(xs, 2, axis=1), axis=-1)  # split H, cat C
    xs = jnp.concatenate(jnp.split(xs, 2, axis=2), axis=-1)  # split W, cat C
    xs = fourier_unit_nhwc(xs, params["wlfu"], params["slfu"], params["blfu"])
    xs = jnp.tile(xs, (1, 2, 2, 1))

    # conv2(x1 + fu + lfu), fused in one Pallas kernel
    y = add3_conv1x1(x1.reshape(-1, c_half), out_fu.reshape(-1, c_half),
                     xs.reshape(-1, c_half), params["w2"])
    y = y.reshape(n, h, w_sp, out_channels)
    return jnp.transpose(y, (0, 3, 1, 2))                    # single NHWC->NCHW


# ---------------------------------------------------------------------------
# Deterministic parameter init (synthetic; BN folded to scale/shift)
# ---------------------------------------------------------------------------
def make_bn_affine(key, c, eps=1e-5):
    k1, k2, k3, k4 = jax.random.split(key, 4)
    gamma = 1.0 + 0.1 * jax.random.normal(k1, (c,), jnp.float32)
    beta = 0.1 * jax.random.normal(k2, (c,), jnp.float32)
    mean = 0.1 * jax.random.normal(k3, (c,), jnp.float32)
    var = 1.0 + 0.1 * jax.random.uniform(k4, (c,), jnp.float32)
    scale = gamma / jnp.sqrt(var + eps)
    shift = beta - mean * scale
    return scale, shift


if __name__ == "__main__":
    key = jax.random.PRNGKey(0)
    in_channels, out_channels = 4, 16
    N, H, W = 2, 16, 16
    keys = jax.random.split(key, 8)

    x = jax.random.normal(keys[0], (N, in_channels, H, W), jnp.float32)

    c_half = out_channels // 2
    params = {
        # weights stored as (Cin, Cout) == PyTorch Conv2d weight[:, :, 0, 0].T
        "w1": 0.2 * jax.random.normal(keys[1], (in_channels, c_half), jnp.float32),
        "wfu": 0.2 * jax.random.normal(keys[2], (2 * c_half, 2 * c_half), jnp.float32),
        "wlfu": 0.2 * jax.random.normal(keys[3], (2 * c_half, 2 * c_half), jnp.float32),
        "w2": 0.2 * jax.random.normal(keys[4], (c_half, out_channels), jnp.float32),
    }
    params["s1"], params["b1"] = make_bn_affine(keys[5], c_half)
    params["sfu"], params["bfu"] = make_bn_affine(keys[6], 2 * c_half)
    params["slfu"], params["blfu"] = make_bn_affine(keys[7], 2 * c_half)

    y = spectral_transform(x, params, out_channels)
    y = jax.block_until_ready(y)
    assert y.shape == (N, out_channels, H, W), y.shape
    assert jnp.all(jnp.isfinite(y))
    print("KERNEL_OK")
</pallas_src>

<mosaic_0001>
module attributes {stable_mosaic.version = 11 : i64} {
  func.func @_conv_bias_relu_kernel(%arg0: i32, %arg1: memref<16x128xf32, #tpu.memory_space<vmem>>, %arg2: memref<128x256xf32, #tpu.memory_space<vmem>>, %arg3: memref<1x256xf32, #tpu.memory_space<vmem>>, %arg4: memref<16x256xf32, #tpu.memory_space<vmem>>) attributes {dimension_semantics = [#tpu.dimension_semantics<parallel>], iteration_bounds = array<i64: 1>, scalar_prefetch = 0 : i64, scratch_operands = 0 : i64, tpu.core_type = #tpu.core_type<tc>, window_params = [{transform_indices = @transform_0, window_bounds = array<i64: 16, 128>}, {pipeline_mode = #tpu.pipeline_mode<synchronous>, transform_indices = @transform_1, window_bounds = array<i64: 128, 256>}, {pipeline_mode = #tpu.pipeline_mode<synchronous>, transform_indices = @transform_2, window_bounds = array<i64: 1, 256>}, {transform_indices = @transform_3, window_bounds = array<i64: 16, 256>}]} {
    %c0 = arith.constant 0 : index
    %c0_0 = arith.constant 0 : index
    %0 = vector.load %arg1[%c0, %c0_0] : memref<16x128xf32, #tpu.memory_space<vmem>>, vector<16x128xf32>
    %c0_1 = arith.constant 0 : index
    %c0_2 = arith.constant 0 : index
    %1 = vector.load %arg2[%c0_1, %c0_2] : memref<128x256xf32, #tpu.memory_space<vmem>>, vector<128x256xf32>
    %cst = arith.constant dense<0.000000e+00> : vector<16x256xf32>
    %2 = tpu.matmul %0, %1, %cst {dimension_numbers = #tpu.dot_dimension_numbers<[1], [0], [0], [1], [0, 0, 1, 1], [], []>} : vector<16x128xf32>, vector<128x256xf32>, vector<16x256xf32> -> vector<16x256xf32>
    %c0_3 = arith.constant 0 : index
    %c0_4 = arith.constant 0 : index
    %3 = vector.load %arg3[%c0_3, %c0_4] : memref<1x256xf32, #tpu.memory_space<vmem>>, vector<1x256xf32>
    %4 = vector.broadcast %3 : vector<1x256xf32> to vector<16x256xf32>
    %5 = arith.addf %2, %4 : vector<16x256xf32>
    %cst_5 = arith.constant 0.000000e+00 : f32
    %6 = vector.broadcast %cst_5 : f32 to vector<16x256xf32>
    %7 = arith.maximumf %5, %6 : vector<16x256xf32>
    %c0_6 = arith.constant 0 : index
    %c0_7 = arith.constant 0 : index
    %8 = vector.load %arg4[%c0_6, %c0_7] : memref<16x256xf32, #tpu.memory_space<vmem>>, vector<16x256xf32>
    tpu.vector_store %arg4[%c0_6, %c0_7], %7 {strides = array<i32>} : memref<16x256xf32, #tpu.memory_space<vmem>>, vector<16x256xf32>,
    return
  }
  func.func @transform_0(%arg0: i32) -> (i32, i32) {
    %c0_i32 = arith.constant 0 : i32
    %c0_i32_0 = arith.constant 0 : i32
    return %arg0, %c0_i32 : i32, i32
  }
  func.func @transform_1(%arg0: i32) -> (i32, i32) {
    %c0_i32 = arith.constant 0 : i32
    %c0_i32_0 = arith.constant 0 : i32
    %c0_i32_1 = arith.constant 0 : i32
    return %c0_i32, %c0_i32_0 : i32, i32
  }
  func.func @transform_2(%arg0: i32) -> (i32, i32) {
    %c0_i32 = arith.constant 0 : i32
    %c0_i32_0 = arith.constant 0 : i32
    %c0_i32_1 = arith.constant 0 : i32
    return %c0_i32, %c0_i32_0 : i32, i32
  }
  func.func @transform_3(%arg0: i32) -> (i32, i32) {
    %c0_i32 = arith.constant 0 : i32
    %c0_i32_0 = arith.constant 0 : i32
    return %arg0, %c0_i32 : i32, i32
  }
}

</mosaic_0001>

<bundles_post_ra>
// kernel: tpu_custom_call.1
= control target key start
LH: loop header
LB: loop body
LE: loop exit
PB: predicated region body
PF: predicated region fallthrough
CT: control target
= control target key end

     0   :  { %8 = vsyncpa [#allocation3], 0  ;;  %s362_s0 = inlined_call_operand.hbm [shape: f32[16,128], index: 0, kind: input, shape index: {}]   ;;  %s363_s1 = inlined_call_operand.hbm [shape: f32[128,256], index: 1, kind: input, shape index: {}]   ;;  %s364_s2 = inlined_call_operand.hbm [shape: f32[1,256], index: 2, kind: input, shape index: {}]   ;;  %s365_s3 = inlined_call_operand.hbm [shape: f32[16,256], index: 3, kind: output, shape index: {}]  }
   0x1   :  { %9 = vsyncpa [#allocation6], 0  ;;  %s28_s14 = sshll.u32 %s363_s1, 4  ;;  %s29_s14 = int_to_ptr.hbm [resolvable:$true] %s28_s14 }
   0x2   :  { %10 = vsyncpa [#allocation4], 0  ;;  %s316_s15 = smov [#allocation5]   ;;  %s15_s19 = sshll.u32 %s362_s0, 4  ;;  %s16_s19 = int_to_ptr.hbm [resolvable:$true] %s15_s19 }
   0x3   :  { %s30_s16 = sshll.u32 %s316_s15, 4  ;;  %s317_s20 = smov 256   ;;  %s31_s16 = int_to_ptr.vmem [resolvable:$true] %s30_s16 }
   0x4   :  { %s318_s21 = smov 16   ;;  %s319_s22 = smov [#allocation2]  }
   0x5   :  { %36 = dma.hbm_to_vmem [thread:$0]  %s29_s14, 4096, %s31_s16, [#allocation6], %s317_s20, %s317_s20, %s318_s21  }
   0x6   :  { %s17_s23 = sshll.u32 %s319_s22, 4  ;;  %s320_s1 = smov 128   ;;  %s18_s23 = int_to_ptr.vmem [resolvable:$true] %s17_s23 }
   0x7   :  { %s321_s24 = smov 8   ;;  %s42_s27 = sshll.u32 %s364_s2, 4  ;;  %s43_s27 = int_to_ptr.hbm [resolvable:$true] %s42_s27 }
   0x8   :  { %23 = dma.hbm_to_vmem [thread:$0]  %s16_s19, 256, %s18_s23, [#allocation3], %s320_s1, %s320_s1, %s321_s24  }
   0x9   :  { %s322_s28 = smov [#allocation7]  }
   0xa   :  { %s44_s0 = sshll.u32 %s322_s28, 4  ;;  %s45_s0 = int_to_ptr.vmem [resolvable:$true] %s44_s0 }
   0xb   :  { %47 = dma.hbm_to_vmem [thread:$0]  %s43_s27, 32, %s45_s0, [#allocation6]  }
   0xc   :  { %310 = dma.done.wait [#allocation3], 256  }
   0xd   :  { %311 = vsyncadd [#allocation3], 4294967040 }
   0xe   :  { %312 = dma.done.wait [#allocation6], 4128  }
   0xf   :  { %313 = vsyncadd [#allocation6], 4294963168  ;;  %v92_v0 = vld [vmem:[#allocation5 + $0xf0] sm:$0xff]  ;;  %v93_v1 = vld [vmem:[#allocation5 + $0xf8] sm:$0xff]  ;;  %s323_s2 = smov [#allocation8]   ;;  %s160_s5 = sshll.u32 %s365_s3, 4  ;;  %s161_s5 = int_to_ptr.hbm [resolvable:$true] %s160_s5 }
  0x10   :  { %v90_v2 = vld [vmem:[#allocation5 + $0xe0] sm:$0xff]  ;;  %174 = vmatpush.msra.mxu2 %v92_v0  ;;  %190 = vmatpush.msra.mxu3 %v93_v1  ;;  %v91_v3 = vld [vmem:[#allocation5 + $0xe8] sm:$0xff]  ;;  %v88_v4 = vld [vmem:[#allocation5 + $0xd0] sm:$0xff]  ;;  %s158_s29 = sshll.u32 %s323_s2, 4  ;;  %s159_s29 = int_to_ptr.vmem [resolvable:$true] %s158_s29 }
  0x11   :  { %v89_v5 = vld [vmem:[#allocation5 + $0xd8] sm:$0xff]  ;;  %100 = vmatpush.msra.mxu0 %v92_v0  ;;  %123 = vmatpush.msra.mxu1 %v93_v1  ;;  %v86_v6 = vld [vmem:[#allocation5 + $0xc0] sm:$0xff]  ;;  %v87_v7 = vld [vmem:[#allocation5 + $0xc8] sm:$0xff] }
  0x12   :  { %175 = vmatpush.msra.mxu2 %v90_v2  ;;  %191 = vmatpush.msra.mxu3 %v91_v3  ;;  %v84_v8 = vld [vmem:[#allocation5 + $0xb0] sm:$0xff]  ;;  %v85_v9 = vld [vmem:[#allocation5 + $0xb8] sm:$0xff]  ;;  %v82_v10 = vld [vmem:[#allocation5 + $0xa0] sm:$0xff] }
  0x13   :  { %101 = vmatpush.msra.mxu0 %v90_v2  ;;  %124 = vmatpush.msra.mxu1 %v91_v3  ;;  %v83_v11 = vld [vmem:[#allocation5 + $0xa8] sm:$0xff]  ;;  %v80_v12 = vld [vmem:[#allocation5 + $0x90] sm:$0xff]  ;;  %v81_v13 = vld [vmem:[#allocation5 + $0x98] sm:$0xff] }
  0x14   :  { %176 = vmatpush.msra.mxu2 %v88_v4  ;;  %192 = vmatpush.msra.mxu3 %v89_v5  ;;  %v78_v14 = vld [vmem:[#allocation5 + $0x80] sm:$0xff]  ;;  %v79_v15 = vld [vmem:[#allocation5 + $0x88] sm:$0xff]  ;;  %v76_v16 = vld [vmem:[#allocation5 + $0x70] sm:$0xff] }
  0x15   :  { %102 = vmatpush.msra.mxu0 %v88_v4  ;;  %125 = vmatpush.msra.mxu1 %v89_v5  ;;  %v77_v17 = vld [vmem:[#allocation5 + $0x78] sm:$0xff]  ;;  %v74_v18 = vld [vmem:[#allocation5 + $0x60] sm:$0xff]  ;;  %v75_v19 = vld [vmem:[#allocation5 + $0x68] sm:$0xff] }
  0x16   :  { %177 = vmatpush.msra.mxu2 %v86_v6  ;;  %193 = vmatpush.msra.mxu3 %v87_v7  ;;  %v72_v20 = vld [vmem:[#allocation5 + $0x50] sm:$0xff]  ;;  %v73_v21 = vld [vmem:[#allocation5 + $0x58] sm:$0xff]  ;;  %v70_v22 = vld [vmem:[#allocation5 + $0x40] sm:$0xff] }
  0x17   :  { %103 = vmatpush.msra.mxu0 %v86_v6  ;;  %126 = vmatpush.msra.mxu1 %v87_v7  ;;  %v71_v23 = vld [vmem:[#allocation5 + $0x48] sm:$0xff]  ;;  %v68_v24 = vld [vmem:[#allocation5 + $0x30] sm:$0xff]  ;;  %v69_v25 = vld [vmem:[#allocation5 + $0x38] sm:$0xff] }
  0x18   :  { %178 = vmatpush.msra.mxu2 %v84_v8  ;;  %194 = vmatpush.msra.mxu3 %v85_v9  ;;  %v66_v26 = vld [vmem:[#allocation5 + $0x20] sm:$0xff]  ;;  %v67_v27 = vld [vmem:[#allocation5 + $0x28] sm:$0xff]  ;;  %v64_v28 = vld [vmem:[#allocation5 + $0x10] sm:$0xff] }
  0x19   :  { %104 = vmatpush.msra.mxu0 %v84_v8  ;;  %127 = vmatpush.msra.mxu1 %v85_v9  ;;  %v65_v29 = vld [vmem:[#allocation5 + $0x18] sm:$0xff]  ;;  %v62_v30 = vld [vmem:[#allocation5] sm:$0xff]  ;;  %v63_v31 = vld [vmem:[#allocation5 + $0x8] sm:$0xff] }
  0x1a   :  { %179 = vmatpush.msra.mxu2 %v82_v10  ;;  %195 = vmatpush.msra.mxu3 %v83_v11  ;;  %v61_v32 = vld [vmem:[#allocation2 + $0x8] sm:$0xff]  ;;  %v60_v33 = vld [vmem:[#allocation2] sm:$0xff]  ;;  %v94_v34 = vld [vmem:[#allocation7] sm:$0x3] }
  0x1b   :  { %105 = vmatpush.msra.mxu0 %v82_v10  ;;  %128 = vmatpush.msra.mxu1 %v83_v11  ;;  %v96_v35 = vperm.slane %v94_v34, 0  ;;  %v97_v36 = vperm.slane %v94_v34, 1 }
  0x1c   :  { %180 = vmatpush.msra.mxu2 %v80_v12  ;;  %196 = vmatpush.msra.mxu3 %v81_v13 }
  0x1d   :  { %106 = vmatpush.msra.mxu0 %v80_v12  ;;  %129 = vmatpush.msra.mxu1 %v81_v13 }
  0x1e   :  { %181 = vmatpush.msra.mxu2 %v78_v14  ;;  %197 = vmatpush.msra.mxu3 %v79_v15 }
  0x1f   :  { %107 = vmatpush.msra.mxu0 %v78_v14  ;;  %130 = vmatpush.msra.mxu1 %v79_v15 }
  0x20   :  { %182 = vmatpush.msra.mxu2 %v76_v16  ;;  %198 = vmatpush.msra.mxu3 %v77_v17 }
  0x21   :  { %108 = vmatpush.msra.mxu0 %v76_v16  ;;  %131 = vmatpush.msra.mxu1 %v77_v17 }
  0x22   :  { %183 = vmatpush.msra.mxu2 %v74_v18  ;;  %199 = vmatpush.msra.mxu3 %v75_v19 }
  0x23   :  { %109 = vmatpush.msra.mxu0 %v74_v18  ;;  %132 = vmatpush.msra.mxu1 %v75_v19 }
  0x24   :  { %184 = vmatpush.msra.mxu2 %v72_v20  ;;  %200 = vmatpush.msra.mxu3 %v73_v21 }
  0x25   :  { %110 = vmatpush.msra.mxu0 %v72_v20  ;;  %133 = vmatpush.msra.mxu1 %v73_v21 }
  0x26   :  { %185 = vmatpush.msra.mxu2 %v70_v22  ;;  %201 = vmatpush.msra.mxu3 %v71_v23 }
  0x27   :  { %111 = vmatpush.msra.mxu0 %v70_v22  ;;  %134 = vmatpush.msra.mxu1 %v71_v23 }
  0x28   :  { %186 = vmatpush.msra.mxu2 %v68_v24  ;;  %202 = vmatpush.msra.mxu3 %v69_v25 }
  0x29   :  { %112 = vmatpush.msra.mxu0 %v68_v24  ;;  %135 = vmatpush.msra.mxu1 %v69_v25 }
  0x2a   :  { %187 = vmatpush.msra.mxu2 %v66_v26  ;;  %203 = vmatpush.msra.mxu3 %v67_v27 }
  0x2b   :  { %113 = vmatpush.msra.mxu0 %v66_v26  ;;  %136 = vmatpush.msra.mxu1 %v67_v27 }
  0x2c   :  { %188 = vmatpush.msra.mxu2 %v64_v28  ;;  %204 = vmatpush.msra.mxu3 %v65_v29 }
  0x2d   :  { %114 = vmatpush.msra.mxu0 %v64_v28  ;;  %137 = vmatpush.msra.mxu1 %v65_v29 }
  0x2e   :  { %189 = vmatpush.msra.mxu2 %v62_v30  ;;  %205 = vmatpush.msra.mxu3 %v63_v31 }
  0x2f   :  { %119 = vmatmul.f32.vlgmr.msra.gmra.mxu2 %v61_v32  ;;  %142 = vmatmul.f32.vlgmr.msra.gmra.mxu3 %v61_v32 }
  0x30   :  { %115 = vmatpush.msra.mxu0 %v62_v30  ;;  %138 = vmatpush.msra.mxu1 %v63_v31 }
  0x31   :  { %116 = vmatmul.f32.vlgmr.msra.gmra.mxu0 %v60_v33  ;;  %139 = vmatmul.f32.vlgmr.msra.gmra.mxu1 %v60_v33 }
  0xae   :  { %v117_v37 = vpop.f32.mrf.mxu0  ;;  %v140_v38 = vpop.f32.mrf.mxu1 }
  0xaf   :  { %v118_v39 = vadd.f32 %v117_v37, %v96_v35  ;;  %v141_v40 = vadd.f32 %v140_v38, %v97_v36 }
  0xb1   :  { %v146_v41 = vmax.f32 %v118_v39, 0.0  ;;  %v147_v42 = vmax.f32 %v141_v40, 0.0 }
  0xb2   :  { %v120_v43 = vpop.f32.mrf.mxu2  ;;  %v143_v44 = vpop.f32.mrf.mxu3 }
  0xb3   :  { %150 = vst [vmem:[#allocation8] sm:$0xff] %v146_v41  ;;  %v121_v45 = vadd.f32 %v120_v43, %v96_v35  ;;  %v144_v46 = vadd.f32 %v143_v44, %v97_v36 }
  0xb4   :  { %151 = vst [vmem:[#allocation8 + $0x8] sm:$0xff] %v147_v42 }
  0xb5   :  { %v148_v47 = vmax.f32 %v121_v45, 0.0  ;;  %v149_v48 = vmax.f32 %v144_v46, 0.0 }
  0xb7   :  { %152 = vst [vmem:[#allocation8 + $0x10] sm:$0xff] %v148_v47 }
  0xb8   :  { %153 = vst [vmem:[#allocation8 + $0x18] sm:$0xff] %v149_v48 }
  0xb9   :  { %166 = dma.vmem_to_hbm [thread:$0]  %s159_s29, 512, %s161_s5, [#allocation4], %s317_s20, %s317_s20, %s318_s21  }
  0xba   :  { %314 = dma.done.wait [#allocation4], 512  }
  0xbb   :  { %315 = vsyncadd [#allocation4], 4294966784 }
  0xbc   :  { %171 = vsyncpa [#allocation3], 1 }
  0xbd   :  { %172 = vsyncpa [#allocation6], 1 }
  0xbe   :  { %173 = vsyncpa [#allocation4], 1 }

</bundles_post_ra>
